<compile_context>
chip_gen: v7x
topology: tpu7x:2x2x1
jax: 0.10.0
libtpu: 0.0.40
codegen_flags: <defaults>
</compile_context>

<pallas_src>
from functools import partial

import jax
import jax.numpy as jnp
from jax.experimental import pallas as pl
from jax.experimental.pallas import tpu as pltpu


# ---------------------------------------------------------------------------
# Parameter packing (run once at agent init, reuse for every forward call)
# ---------------------------------------------------------------------------
def prepare_params(w1, b1, w2, b2):
    """Fold biases into weights and pad the action dim to 128 lanes.

    Args:
      w1: (S, H) float32 -- transpose of PyTorch l1.weight (y = x @ w1 + b1).
      b1: (H,)   float32.
      w2: (H, A) float32 -- transpose of PyTorch l2.weight.
      b2: (A,)   float32.
    Returns:
      w1_aug: (S+1, H)     float32
      w2_aug: (H+1, A_pad) float32
    """
    S, H = w1.shape
    H2, A = w2.shape
    assert H == H2 and b1.shape == (H,) and b2.shape == (A,)
    A_pad = ((A + 127) // 128) * 128

    w1_aug = jnp.concatenate([w1 + b1[None, :], b1[None, :]], axis=0)   # (S+1, H)
    w2_aug = jnp.concatenate([w2, b2[None, :]], axis=0)                  # (H+1, A)
    w2_aug = jnp.pad(w2_aug, ((0, 0), (0, A_pad - A)))                   # (H+1, A_pad)
    return w1_aug.astype(jnp.float32), w2_aug.astype(jnp.float32)


# ---------------------------------------------------------------------------
# Single-state kernel (matches Agent.forward(state))
# ---------------------------------------------------------------------------
def _agent_kernel(state_ref, w1_ref, w2_ref, out_ref):
    # state_ref: SMEM (1,) int32
    # w1_ref:    VMEM (S+1, 1, H)  -- bias folded, row S = b1
    # w2_ref:    VMEM (H+1, A_pad) -- row H = b2
    # out_ref:   VMEM (1, A_pad)
    S_aug = w1_ref.shape[0]
    H = w1_ref.shape[2]
    S = S_aug - 1

    s = state_ref[0]
    idx = jnp.where((s >= 0) & (s < S), s, S)        # OOB -> bias-only row

    z1 = w1_ref[idx]                                  # (1, H): W1[s] + b1
    h = jax.nn.sigmoid(z1)                            # EUP
    q = jnp.dot(h, w2_ref[:H, :],
                preferred_element_type=jnp.float32)   # MXU (1,H)x(H,A_pad)
    out_ref[...] = q + w2_ref[H:, :]                  # + b2 (folded row)


@partial(jax.jit, static_argnames=("n_actions",))
def agent_forward(state, w1_aug, w2_aug, *, n_actions):
    """Single-state DQN forward. Returns Q-values of shape (n_actions,)."""
    S_aug, H = w1_aug.shape
    H1, A_pad = w2_aug.shape
    assert H1 == H + 1

    state = jnp.asarray(state, jnp.int32).reshape((1,))
    w1_3d = w1_aug[:, None, :]                        # (S+1, 1, H)

    out = pl.pallas_call(
        _agent_kernel,
        out_shape=jax.ShapeDtypeStruct((1, A_pad), jnp.float32),
        in_specs=[
            pl.BlockSpec(memory_space=pltpu.SMEM),    # state scalar
            pl.BlockSpec(memory_space=pltpu.VMEM),    # w1_aug (S+1,1,H)
            pl.BlockSpec(memory_space=pltpu.VMEM),    # w2_aug (H+1,A_pad)
        ],
        out_specs=pl.BlockSpec(memory_space=pltpu.VMEM),
        cost_estimate=pl.CostEstimate(
            flops=2 * H * (1 + A_pad),
            transcendentals=H,
            bytes_accessed=4 * (w1_aug.size + w2_aug.size + A_pad) + 4,
        ),
    )(state, w1_3d, w2_aug)
    return out[0, :n_actions]                         # .view(-1) in PyTorch


# ---------------------------------------------------------------------------
# Batched kernel (rollout / training throughput path)
# ---------------------------------------------------------------------------
def _agent_batched_kernel(states_ref, w1_ref, w2_ref, out_ref):
    # states_ref: VMEM (TB, 1) int32
    # w1_ref:     VMEM (S+1, H)
    # w2_ref:     VMEM (H+1, A_pad)
    # out_ref:    VMEM (TB, A_pad)
    S_aug, H = w1_ref.shape
    S = S_aug - 1
    TB = states_ref.shape[0]

    idx = states_ref[...]                                         # (TB, 1)
    idx = jnp.where((idx >= 0) & (idx < S), idx, S)               # OOB -> bias row
    lanes = jax.lax.broadcasted_iota(jnp.int32, (TB, S_aug), 1)
    onehot = (lanes == idx).astype(jnp.float32)                   # (TB, S+1)

    z1 = jnp.dot(onehot, w1_ref[...],
                 preferred_element_type=jnp.float32)              # MXU gather + bias
    h = jax.nn.sigmoid(z1)                                        # (TB, H)
    q = jnp.dot(h, w2_ref[:H, :],
                preferred_element_type=jnp.float32)               # MXU
    out_ref[...] = q + w2_ref[H:, :]                              # + b2


@partial(jax.jit, static_argnames=("n_actions", "block_b"))
def agent_forward_batched(states, w1_aug, w2_aug, *, n_actions, block_b=8):
    """Batched DQN forward. states: (B,) int32, B % block_b == 0 -> (B, n_actions)."""
    B = states.shape[0]
    S_aug, H = w1_aug.shape
    H1, A_pad = w2_aug.shape
    assert H1 == H + 1 and B % block_b == 0

    states2 = states.astype(jnp.int32).reshape(B, 1)

    out = pl.pallas_call(
        _agent_batched_kernel,
        out_shape=jax.ShapeDtypeStruct((B, A_pad), jnp.float32),
        grid=(B // block_b,),
        in_specs=[
            pl.BlockSpec((block_b, 1), lambda i: (i, 0)),
            pl.BlockSpec((S_aug, H), lambda i: (0, 0)),
            pl.BlockSpec((H + 1, A_pad), lambda i: (0, 0)),
        ],
        out_specs=pl.BlockSpec((block_b, A_pad), lambda i: (i, 0)),
        compiler_params=pltpu.CompilerParams(
            dimension_semantics=("parallel",)),       # v7x megacore splits batch
        cost_estimate=pl.CostEstimate(
            flops=2 * B * (S_aug * H + H * A_pad),
            transcendentals=B * H,
            bytes_accessed=4 * (w1_aug.size + w2_aug.size + B * A_pad + B),
        ),
    )(states2, w1_aug, w2_aug)
    return out[:, :n_actions]


# ---------------------------------------------------------------------------
if __name__ == "__main__":
    # Small discrete env, FrozenLake-like: 16 observations, 4 actions.
    S = 16          # observation_space_size == hidden_size
    H = S
    A = 4           # action_space_size

    key = jax.random.PRNGKey(0)
    k1, k2 = jax.random.split(key)

    # uniform_linear_layer: weight ~ U[0,1), bias = -0.02.
    # PyTorch weights are (out, in); we take them transposed (in, out).
    w1 = jax.random.uniform(k1, (S, H), dtype=jnp.float32)
    b1 = jnp.full((H,), -0.02, dtype=jnp.float32)
    w2 = jax.random.uniform(k2, (H, A), dtype=jnp.float32)
    b2 = jnp.full((A,), -0.02, dtype=jnp.float32)

    # One-time param packing (agent init).
    w1_aug, w2_aug = prepare_params(w1, b1, w2, b2)
    w1_aug, w2_aug = jax.block_until_ready((w1_aug, w2_aug))

    # --- single-state forward (Agent.forward) ------------------------------
    state = jnp.asarray(3, dtype=jnp.int32)   # device scalar: no per-call host copy
    q = agent_forward(state, w1_aug, w2_aug, n_actions=A)
    jax.block_until_ready(q)

    onehot = jax.nn.one_hot(jnp.array([3]), S, dtype=jnp.float32)
    ref = (jax.nn.sigmoid(onehot @ w1 + b1) @ w2 + b2).reshape(-1)
    assert q.shape == (A,)
    assert jnp.allclose(q, ref, atol=1e-5, rtol=1e-5), (q, ref)

    # --- batched forward (rollout path) -------------------------------------
    B = 8
    states = jnp.arange(B, dtype=jnp.int32) % S
    qb = agent_forward_batched(states, w1_aug, w2_aug, n_actions=A)
    jax.block_until_ready(qb)

    oh = jax.nn.one_hot(states, S, dtype=jnp.float32)
    refb = jax.nn.sigmoid(oh @ w1 + b1) @ w2 + b2
    assert qb.shape == (B, A)
    assert jnp.allclose(qb, refb, atol=1e-5, rtol=1e-5), (qb, refb)

    print("KERNEL_OK")
</pallas_src>

<mosaic_0001>
module attributes {stable_mosaic.version = 11 : i64} {
  func.func @_agent_kernel(%arg0: memref<1xi32, #tpu.memory_space<smem>>, %arg1: memref<17x1x16xf32, #tpu.memory_space<vmem>>, %arg2: memref<17x128xf32, #tpu.memory_space<vmem>>, %arg3: memref<1x128xf32, #tpu.memory_space<vmem>>) attributes {dimension_semantics = [], scalar_prefetch = 0 : i64, scratch_operands = 0 : i64, tpu.core_type = #tpu.core_type<tc>} {
    %c0 = arith.constant 0 : index
    %0 = memref.load %arg0[%c0] : memref<1xi32, #tpu.memory_space<smem>>
    %c0_i32 = arith.constant 0 : i32
    %1 = arith.cmpi sge, %0, %c0_i32 : i32
    %c16_i32 = arith.constant 16 : i32
    %2 = arith.cmpi slt, %0, %c16_i32 : i32
    %3 = arith.andi %1, %2 : i1
    %c16_i32_0 = arith.constant 16 : i32
    %4 = arith.select %3, %0, %c16_i32_0 : i32
    %5 = arith.index_cast %4 : i32 to index
    %c0_1 = arith.constant 0 : index
    %c0_2 = arith.constant 0 : index
    %6 = vector.load %arg1[%5, %c0_1, %c0_2] : memref<17x1x16xf32, #tpu.memory_space<vmem>>, vector<1x1x16xf32>
    %7 = vector.shape_cast %6 : vector<1x1x16xf32> to vector<1x16xf32>
    %8 = arith.negf %7 : vector<1x16xf32>
    %9 = math.exp %8 : vector<1x16xf32>
    %cst = arith.constant 1.000000e+00 : f32
    %10 = vector.broadcast %cst : f32 to vector<1x16xf32>
    %11 = arith.addf %10, %9 : vector<1x16xf32>
    %12 = arith.divf %10, %11 : vector<1x16xf32>
    %c0_3 = arith.constant 0 : index
    %c0_4 = arith.constant 0 : index
    %13 = vector.load %arg2[%c0_3, %c0_4] : memref<17x128xf32, #tpu.memory_space<vmem>>, vector<16x128xf32>
    %cst_5 = arith.constant dense<0.000000e+00> : vector<1x128xf32>
    %14 = tpu.matmul %12, %13, %cst_5 {dimension_numbers = #tpu.dot_dimension_numbers<[1], [0], [0], [1], [0, 0, 1, 1], [], []>} : vector<1x16xf32>, vector<16x128xf32>, vector<1x128xf32> -> vector<1x128xf32>
    %c16 = arith.constant 16 : index
    %c0_6 = arith.constant 0 : index
    %15 = vector.load %arg2[%c16, %c0_6] : memref<17x128xf32, #tpu.memory_space<vmem>>, vector<1x128xf32>
    %16 = arith.addf %14, %15 : vector<1x128xf32>
    %c0_7 = arith.constant 0 : index
    %c0_8 = arith.constant 0 : index
    %17 = vector.load %arg3[%c0_7, %c0_8] : memref<1x128xf32, #tpu.memory_space<vmem>>, vector<1x128xf32>
    tpu.vector_store %arg3[%c0_7, %c0_8], %16 {strides = array<i32>} : memref<1x128xf32, #tpu.memory_space<vmem>>, vector<1x128xf32>,
    return
  }
}

</mosaic_0001>

<bundles_post_ra>
// kernel: agent_forward.1
= control target key start
LH: loop header
LB: loop body
LE: loop exit
PB: predicated region body
PF: predicated region fallthrough
CT: control target
= control target key end

     0   :  { %v135_v0 = vmov 0.0|0.0   ;;  %vm136_vm0 = vmmov 0   ;;  %v137_v3 = vmov 0.0   ;;  %vm32_vm1 = vcmask 130048   ;;  %s182_s2 = inlined_call_operand.vmem [shape: f32[17,128], index: 2, kind: input, shape index: {}]   ;;  %s183_s0 = inlined_call_operand.<no memory space> [shape: s32[1], index: 0, kind: input, shape index: {}]   ;;  %s184_s1 = inlined_call_operand.vmem [shape: f32[17,1,16], index: 1, kind: input, shape index: {}]   ;;  %s185_s3 = inlined_call_operand.vmem [shape: f32[1,128], index: 3, kind: output, shape index: {}]  }
   0x1   :  { %125 = vmatprep.subr.bf16.mxu0 %v135_v0  ;;  %v29_v1 = vld [vmem:[%s182_s2] sm:$0xff]  ;;  %v30_v2 = vld [vmem:[%s182_s2 + $0x8] sm:$0xff]  ;;  %122 = vmatprep.mubr.msk.f32.mxu0 %vm136_vm0, %v137_v3  ;;  %p16_p0 = scmp.ge.s32.totalorder %s183_s0, 0  ;;  %p17_p1 = scmp.lt.s32.totalorder %s183_s0, 16  ;;  %v31_v10 = vld [vmem:[%s182_s2 + $0x10] sm:$0x1] }
   0x2   :  { %v126_v4 = vpack.c.bf16 %v30_v2, %v29_v1 }
   0x3   :  { %p18_p2 = pnand %p17_p1, %p16_p0 }
   0x4   :  { %127 = vmatpush3.bf16.msra.mxu0 %v126_v4 }
   0x5   :  { %s187_s0 = smov (%p18_p2, %s183_s0), 16 }
   0x6   :  { %s21_s24 = scalar_lea.vmem %s184_s1, %s187_s0 }
   0x7   :  { %v22_v5 = vld [vmem:[%s21_s24] sm:$0x1] }
   0x8   :  { %v113_v6 = vmul.f32 -1.442695, %v22_v5 }
   0xa   :  { %131 = vpow2.f32 %v113_v6 }
  0x14   :  { %v132_v7 = vpop.eup %131 }
  0x15   :  { %v26_v8 = vadd.f32 1.0, %v132_v7 }
  0x17   :  { %133 = vrcp.f32 %v26_v8 }
  0x21   :  { %v134_v9 = vpop.eup %133 }
  0x22   :  { %123 = vmatmul.mubr.msk.f32.vlgmr.msra.gmra.mrb[0].mxu0 %vm32_vm1, %v134_v9 }
  0xf5   :  { %v102_v11 = vpop.f32.mrb[0].mxu0 }
  0xf6   :  { %v103_v12 = vadd.f32 %v102_v11, %v31_v10  ;;  %v124_v13 = vpop.f32.mrb[1].mxu0 }
  0xf8   :  { %106 = vst [vmem:[%s185_s3] sm:$0x1] %v103_v12 }

</bundles_post_ra>
